<compile_context>
chip_gen: v5e
topology: v5e:2x2
jax: 0.10.0
libtpu: 0.0.40
codegen_flags: <defaults>
</compile_context>

<pallas_src>
import jax
import jax.numpy as jnp
from jax.experimental import pallas as pl
from jax.experimental.pallas import tpu as pltpu


def _stack_and_sum_kernel(x_ref, y_ref, o_ref):
    # stack([x, y], dim).sum(dim) == x + y  (size-2 reduction fused on the VPU).
    o_ref[...] = x_ref[...] + y_ref[...]


def _round_up(n, m):
    return -(-n // m) * m


def _choose_lane(total):
    # Widest lane (multiple of 128) that divides the element count: wide,
    # unmasked vst slabs and fewer grid steps.
    for lane in (1024, 512, 256, 128):
        if total % lane == 0:
            return lane
    return None


def _choose_tile_rows(rows, lane, itemsize, target_block_bytes=4 << 20):
    # Biggest row-tile under a ~4 MiB/block budget:
    #   3 arrays x 2 pipeline buffers x 4 MiB = 24 MiB of VMEM.  We raise the
    #   scoped-VMEM limit to 48 MiB in CompilerParams so this fits on v5e
    #   (16 MiB default / 128 MiB physical), v6e (32/128) and v7x (32/64).
    # Rows are a multiple of 32 so f32 (8,128), bf16 (16,128) and int8/fp8
    # (32,128) packed vregs all tile cleanly.
    tr = max(32, (target_block_bytes // (lane * itemsize)) // 32 * 32)
    if rows <= 32:
        return rows  # single full-extent block (always a legal block shape)
    # Guarantee >= 2 grid steps so the "parallel" grid axis can be sharded
    # across both TensorCores on v7x (no effect on single-TC v5e/v6e).
    half = _round_up((rows + 1) // 2, 32)
    return min(tr, half, rows)


def stack_and_sum(x, y, dim=-1, *, min_pallas_bytes=1 << 20):
    """Pallas TPU implementation of StackAndSum: stack([x, y], dim).sum(dim) == x + y."""
    assert x.shape == y.shape and x.dtype == y.dtype
    # NOTE: torch.stack(...).sum() promotes bool/int dtypes (e.g. bool->int64);
    # this implementation keeps x.dtype, which matches the float use-case.
    del dim  # result is x + y regardless of the stacking axis
    orig_shape = x.shape
    total = x.size
    itemsize = jnp.dtype(x.dtype).itemsize

    lane = _choose_lane(total)
    # Small inputs: fixed pallas_call/grid overhead dominates; lane-unaligned
    # inputs: padding both inputs + slicing the output would roughly double
    # HBM traffic.  In both cases XLA's fused elementwise add is already at
    # the HBM roofline, so just return it.
    if lane is None or total * itemsize < min_pallas_bytes:
        return x + y

    rows = total // lane
    x2 = x.reshape(rows, lane)
    y2 = y.reshape(rows, lane)

    tile_rows = _choose_tile_rows(rows, lane, itemsize)
    # Partial last block (if any) is masked by Pallas: OOB reads feed values
    # that are never written back, OOB writes are dropped. No padding needed.
    grid = (pl.cdiv(rows, tile_rows),)

    out2 = pl.pallas_call(
        _stack_and_sum_kernel,
        out_shape=jax.ShapeDtypeStruct((rows, lane), x.dtype),
        grid=grid,
        in_specs=[
            pl.BlockSpec((tile_rows, lane), lambda i: (i, 0)),
            pl.BlockSpec((tile_rows, lane), lambda i: (i, 0)),
        ],
        out_specs=pl.BlockSpec((tile_rows, lane), lambda i: (i, 0)),
        compiler_params=pltpu.CompilerParams(
            dimension_semantics=("parallel",),   # shard grid across TCs (v7x)
            vmem_limit_bytes=48 << 20,           # 24 MiB footprint fits all gens
        ),
        # Advisory hint: memory-bound custom call (1 add/elem, 3N bytes moved).
        cost_estimate=pl.CostEstimate(
            flops=total,
            transcendentals=0,
            bytes_accessed=3 * total * itemsize,
        ),
    )(x2, y2)

    return out2.reshape(orig_shape)


if __name__ == "__main__":
    key = jax.random.PRNGKey(0)
    kx, ky = jax.random.split(key)

    # 1) Module-implied small NCHW shape (batch=2, channels=4, spatial=16x16).
    #    Force the Pallas path (min_pallas_bytes=0) so the kernel itself runs
    #    at this shape, and also validate the default small-input fallback.
    x = jax.random.normal(kx, (2, 4, 16, 16), dtype=jnp.float32)
    y = jax.random.normal(ky, (2, 4, 16, 16), dtype=jnp.float32)
    ref = jnp.stack([x, y], axis=-1).sum(axis=-1)

    out = jax.block_until_ready(stack_and_sum(x, y, min_pallas_bytes=0))
    assert out.shape == ref.shape
    assert jnp.allclose(out, ref, atol=1e-6), "mismatch vs reference (pallas, small)"

    out_fb = jax.block_until_ready(stack_and_sum(x, y))  # small-input fallback
    assert jnp.allclose(out_fb, ref, atol=1e-6), "mismatch vs reference (fallback)"

    # 2) Larger aligned shape: multi-step grid with a partial last block
    #    (rows % tile_rows != 0), exercising Pallas OOB masking + megacore split.
    x2 = jax.random.normal(kx, (5, 7, 128, 128), dtype=jnp.float32)
    y2 = jax.random.normal(ky, (5, 7, 128, 128), dtype=jnp.float32)
    out2 = jax.block_until_ready(stack_and_sum(x2, y2))
    ref2 = jnp.stack([x2, y2], axis=0).sum(axis=0)
    assert out2.shape == ref2.shape
    assert jnp.allclose(out2, ref2, atol=1e-6), "mismatch vs reference (pallas, tiled)"

    # 3) Odd element count -> lane-unaligned fallback (plain fused add, no pad).
    x3 = jax.random.normal(kx, (3, 5, 7, 11), dtype=jnp.float32)
    y3 = jax.random.normal(ky, (3, 5, 7, 11), dtype=jnp.float32)
    out3 = jax.block_until_ready(stack_and_sum(x3, y3))
    ref3 = jnp.stack([x3, y3], axis=-1).sum(axis=-1)
    assert out3.shape == ref3.shape
    assert jnp.allclose(out3, ref3, atol=1e-6), "mismatch vs reference (unaligned)"

    print("KERNEL_OK")
</pallas_src>

<mosaic_0001>
module attributes {stable_mosaic.version = 11 : i64} {
  func.func @_stack_and_sum_kernel(%arg0: i32, %arg1: memref<2x1024xf32, #tpu.memory_space<vmem>>, %arg2: memref<2x1024xf32, #tpu.memory_space<vmem>>, %arg3: memref<2x1024xf32, #tpu.memory_space<vmem>>) attributes {dimension_semantics = [#tpu.dimension_semantics<parallel>], iteration_bounds = array<i64: 1>, scalar_prefetch = 0 : i64, scratch_operands = 0 : i64, tpu.core_type = #tpu.core_type<tc>, window_params = [{transform_indices = @transform_0, window_bounds = array<i64: 2, 1024>}, {transform_indices = @transform_1, window_bounds = array<i64: 2, 1024>}, {transform_indices = @transform_2, window_bounds = array<i64: 2, 1024>}]} {
    %c0 = arith.constant 0 : index
    %c0_0 = arith.constant 0 : index
    %0 = vector.load %arg1[%c0, %c0_0] : memref<2x1024xf32, #tpu.memory_space<vmem>>, vector<2x1024xf32>
    %c0_1 = arith.constant 0 : index
    %c0_2 = arith.constant 0 : index
    %1 = vector.load %arg2[%c0_1, %c0_2] : memref<2x1024xf32, #tpu.memory_space<vmem>>, vector<2x1024xf32>
    %2 = arith.addf %0, %1 : vector<2x1024xf32>
    %c0_3 = arith.constant 0 : index
    %c0_4 = arith.constant 0 : index
    %3 = vector.load %arg3[%c0_3, %c0_4] : memref<2x1024xf32, #tpu.memory_space<vmem>>, vector<2x1024xf32>
    tpu.vector_store %arg3[%c0_3, %c0_4], %2 {strides = array<i32>} : memref<2x1024xf32, #tpu.memory_space<vmem>>, vector<2x1024xf32>,
    return
  }
  func.func @transform_0(%arg0: i32) -> (i32, i32) {
    %c0_i32 = arith.constant 0 : i32
    %c0_i32_0 = arith.constant 0 : i32
    return %arg0, %c0_i32 : i32, i32
  }
  func.func @transform_1(%arg0: i32) -> (i32, i32) {
    %c0_i32 = arith.constant 0 : i32
    %c0_i32_0 = arith.constant 0 : i32
    return %arg0, %c0_i32 : i32, i32
  }
  func.func @transform_2(%arg0: i32) -> (i32, i32) {
    %c0_i32 = arith.constant 0 : i32
    %c0_i32_0 = arith.constant 0 : i32
    return %arg0, %c0_i32 : i32, i32
  }
}

</mosaic_0001>

<bundles_post_ra>
// kernel: tpu_custom_call.1
= control target key start
LH: loop header
LB: loop body
LE: loop exit
PB: predicated region body
PF: predicated region fallthrough
CT: control target
= control target key end

     0   :  { %7 = vsyncpa [#allocation3], 0  ;;  %s174_s0 = inlined_call_operand.hbm [shape: f32[2,1024], index: 0, kind: input, shape index: {}]   ;;  %s175_s1 = inlined_call_operand.hbm [shape: f32[2,1024], index: 1, kind: input, shape index: {}]   ;;  %s176_s2 = inlined_call_operand.hbm [shape: f32[2,1024], index: 2, kind: output, shape index: {}]  }
   0x1   :  { %8 = vsyncpa [#allocation6], 0 }
   0x2   :  { %9 = vsyncpa [#allocation4], 0  ;;  %s15_s11 = sshll.u32 %s174_s0, 4  ;;  %s147_s12 = smov [#allocation2]   ;;  %s16_s11 = int_to_ptr.hbm [resolvable:$true] %s15_s11 }
   0x3   :  { %s17_s13 = sshll.u32 %s147_s12, 4  ;;  %s26_s16 = sshll.u32 %s175_s1, 4  ;;  %s18_s13 = int_to_ptr.vmem [resolvable:$true] %s17_s13  ;;  %s27_s16 = int_to_ptr.hbm [resolvable:$true] %s26_s16 }
   0x4   :  { %20 = dma.hbm_to_vmem [thread:$0]  %s16_s11, 256, %s18_s13, [#allocation3]  }
   0x5   :  { %s148_s17 = smov [#allocation5]  }
   0x6   :  { %s28_s18 = sshll.u32 %s148_s17, 4  ;;  %s29_s18 = int_to_ptr.vmem [resolvable:$true] %s28_s18 }
   0x7   :  { %31 = dma.hbm_to_vmem [thread:$0]  %s27_s16, 256, %s29_s18, [#allocation6]  }
   0x8   :  { %141 = dma.done.wait [#allocation3], 256  }
   0x9   :  { %142 = vsyncadd [#allocation3], 4294967040 }
   0xa   :  { %143 = dma.done.wait [#allocation6], 256  }
   0xb   :  { %144 = vsyncadd [#allocation6], 4294967040  ;;  %s149_s19 = smov [#allocation7]   ;;  %s55_s22 = sshll.u32 %s176_s2, 4  ;;  %v40_v0 = vld [vmem:[#allocation2] sm:$0xff]  ;;  %v42_v1 = vld [vmem:[#allocation5] sm:$0xff]  ;;  %s56_s22 = int_to_ptr.hbm [resolvable:$true] %s55_s22 }
   0xc   :  { %s53_s0 = sshll.u32 %s149_s19, 4  ;;  %v41_v2 = vld [vmem:[#allocation2 + $0x8] sm:$0xff]  ;;  %v44_v3 = vadd.f32 %v42_v1, %v40_v0  ;;  %v43_v4 = vld [vmem:[#allocation5 + $0x8] sm:$0xff]  ;;  %s54_s0 = int_to_ptr.vmem [resolvable:$true] %s53_s0 }
   0xd   :  { %v45_v5 = vadd.f32 %v43_v4, %v41_v2 }
   0xe   :  { %46 = vst [vmem:[#allocation7] sm:$0xff] %v44_v3 }
   0xf   :  { %47 = vst [vmem:[#allocation7 + $0x8] sm:$0xff] %v45_v5 }
  0x10   :  { %58 = dma.vmem_to_hbm [thread:$0]  %s54_s0, 256, %s56_s22, [#allocation4]  }
  0x11   :  { %145 = dma.done.wait [#allocation4], 256  }
  0x12   :  { %146 = vsyncadd [#allocation4], 4294967040 }
  0x13   :  { %63 = vsyncpa [#allocation3], 1 }
  0x14   :  { %64 = vsyncpa [#allocation6], 1 }
  0x15   :  { %65 = vsyncpa [#allocation4], 1 }

</bundles_post_ra>
